<compile_context>
chip_gen: v7x
topology: tpu7x:2x2x1
jax: 0.10.0
libtpu: 0.0.40
codegen_flags: <defaults>
</compile_context>

<pallas_src>
import functools

import jax
import jax.numpy as jnp
import numpy as np
from jax.experimental import pallas as pl
from jax.experimental.pallas import tpu as pltpu


# ----------------------------------------------------------------------------
# Helpers
# ----------------------------------------------------------------------------
def _round_up(x, m):
    return ((x + m - 1) // m) * m


def _pick_row_tile(rows, cap=512):
    """Largest multiple-of-8 divisor of `rows` that is <= cap."""
    assert rows % 8 == 0, rows
    t = min(rows, cap)
    t -= t % 8
    while rows % t != 0:
        t -= 8
    return t


def _pick_t_tile(T, cap=16):
    """Largest divisor of T that is <= cap (timesteps per grid step)."""
    t = min(T, cap)
    while T % t != 0:
        t -= 1
    return t


# ----------------------------------------------------------------------------
# Kernel 1 & 3: lane-dense  X @ W + b  (used for the input projection and the
# final FC).  Grid is "parallel" over row tiles; W and b stay resident.
# ----------------------------------------------------------------------------
def _matmul_bias_kernel(x_ref, w_ref, b_ref, o_ref):
    o_ref[...] = (jnp.dot(x_ref[...], w_ref[...],
                          preferred_element_type=jnp.float32)
                  + b_ref[...]).astype(o_ref.dtype)


def matmul_bias_pallas(x, w, b, out_dtype=jnp.float32):
    """x: (R, K), w: (K, N), b: (1, N) -> (R, N)."""
    R, K = x.shape
    _, N = w.shape
    row_tile = _pick_row_tile(R)
    return pl.pallas_call(
        _matmul_bias_kernel,
        out_shape=jax.ShapeDtypeStruct((R, N), out_dtype),
        grid_spec=pltpu.PrefetchScalarGridSpec(
            num_scalar_prefetch=0,
            grid=(R // row_tile,),
            in_specs=[
                pl.BlockSpec((row_tile, K), lambda r: (r, 0)),
                pl.BlockSpec((K, N), lambda r: (0, 0)),
                pl.BlockSpec((1, N), lambda r: (0, 0)),
            ],
            out_specs=pl.BlockSpec((row_tile, N), lambda r: (r, 0)),
        ),
        compiler_params=pltpu.CompilerParams(
            dimension_semantics=("parallel",)),
    )(x, w, b)


# ----------------------------------------------------------------------------
# Kernel 2: serial LSTM recurrence over time tiles.
#   gx_ref  : (T_TILE, B_pad, 4*H_pad) precomputed x@Wih^T + bias (f32)
#   whh_ref : (H_pad, 4*H_pad) packed recurrent weight (bf16)
# Outputs: h for all timesteps (bf16), final h and c (f32).
# ----------------------------------------------------------------------------
def _lstm_recurrence_kernel(gx_ref, whh_ref,
                            h_all_ref, h_last_ref, c_last_ref,
                            h_sc, c_sc, *, h_pad, t_tile):
    @pl.when(pl.program_id(0) == 0)
    def _init():
        h_sc[...] = jnp.zeros_like(h_sc)
        c_sc[...] = jnp.zeros_like(c_sc)

    def _sigmoid(z):
        # sigmoid(z) == 0.5 * (tanh(z/2) + 1): single transcendental type.
        return 0.5 * (jnp.tanh(0.5 * z) + 1.0)

    def step(i, carry):
        h_prev = h_sc[...]
        c_prev = c_sc[...]
        gates = gx_ref[i] + jnp.dot(h_prev.astype(jnp.bfloat16), whh_ref[...],
                                    preferred_element_type=jnp.float32)
        # Gate order matches PyTorch: [i, f, g, o]; each slice is a full vreg.
        i_g = _sigmoid(gates[:, 0 * h_pad:1 * h_pad])
        f_g = _sigmoid(gates[:, 1 * h_pad:2 * h_pad])
        g_g = jnp.tanh(gates[:, 2 * h_pad:3 * h_pad])
        o_g = _sigmoid(gates[:, 3 * h_pad:4 * h_pad])

        c_new = f_g * c_prev + i_g * g_g
        h_new = o_g * jnp.tanh(c_new)

        c_sc[...] = c_new
        h_sc[...] = h_new
        h_all_ref[i] = h_new.astype(h_all_ref.dtype)
        return carry

    jax.lax.fori_loop(0, t_tile, step, 0, unroll=True)

    # Write final states every grid step (cheap; avoids relying on deferred
    # writeback of a block that is only touched on the last step).
    h_last_ref[...] = h_sc[...]
    c_last_ref[...] = c_sc[...]


def lstm_recurrence_pallas(gx, whh_bf16, *, t_tile):
    T, B_pad, four_hp = gx.shape
    H_pad = four_hp // 4
    kernel = functools.partial(_lstm_recurrence_kernel,
                               h_pad=H_pad, t_tile=t_tile)
    return pl.pallas_call(
        kernel,
        out_shape=(
            jax.ShapeDtypeStruct((T, B_pad, H_pad), jnp.bfloat16),
            jax.ShapeDtypeStruct((B_pad, H_pad), jnp.float32),
            jax.ShapeDtypeStruct((B_pad, H_pad), jnp.float32),
        ),
        grid_spec=pltpu.PrefetchScalarGridSpec(
            num_scalar_prefetch=0,
            grid=(T // t_tile,),
            in_specs=[
                pl.BlockSpec((t_tile, B_pad, four_hp), lambda s: (s, 0, 0)),
                pl.BlockSpec((H_pad, four_hp), lambda s: (0, 0)),
            ],
            out_specs=[
                pl.BlockSpec((t_tile, B_pad, H_pad), lambda s: (s, 0, 0)),
                pl.BlockSpec((B_pad, H_pad), lambda s: (0, 0)),
                pl.BlockSpec((B_pad, H_pad), lambda s: (0, 0)),
            ],
            scratch_shapes=[
                pltpu.VMEM((B_pad, H_pad), jnp.float32),   # h state
                pltpu.VMEM((B_pad, H_pad), jnp.float32),   # c state
            ],
        ),
        compiler_params=pltpu.CompilerParams(
            dimension_semantics=("arbitrary",)),
    )(gx, whh_bf16)


# ----------------------------------------------------------------------------
# Weight packing: pad H -> H_pad (mult of 128), O -> O_pad (mult of 128),
# pre-transpose to (in, out), pre-combine b_ih + b_hh, cast matmul weights bf16.
# ----------------------------------------------------------------------------
def _pack_weights(w_ih, w_hh, b_ih, b_hh, w_fc, b_fc, H, H_pad, O, O_pad):
    E = w_ih.shape[1]
    four_hp = 4 * H_pad
    wih_p = jnp.zeros((E, four_hp), jnp.float32)
    whh_p = jnp.zeros((H_pad, four_hp), jnp.float32)
    b_p = jnp.zeros((1, four_hp), jnp.float32)
    b_sum = (b_ih + b_hh).astype(jnp.float32)
    for k in range(4):
        wih_p = wih_p.at[:, k * H_pad:k * H_pad + H].set(
            w_ih[k * H:(k + 1) * H, :].T)
        whh_p = whh_p.at[:H, k * H_pad:k * H_pad + H].set(
            w_hh[k * H:(k + 1) * H, :].T)
        b_p = b_p.at[:, k * H_pad:k * H_pad + H].set(
            b_sum[k * H:(k + 1) * H][None, :])
    wfc_p = jnp.zeros((H_pad, O_pad), jnp.float32).at[:H, :O].set(w_fc.T)
    bfc_p = jnp.zeros((1, O_pad), jnp.float32).at[:, :O].set(b_fc[None, :])
    return (wih_p.astype(jnp.bfloat16), whh_p.astype(jnp.bfloat16), b_p,
            wfc_p.astype(jnp.bfloat16), bfc_p)


# ----------------------------------------------------------------------------
# CharLSTM forward: embedding gather (XLA glue) + the three Pallas stages.
# ----------------------------------------------------------------------------
def char_lstm_forward(params, token_ids):
    """token_ids: (B, T) int32.  Returns (out (B,T,O), (h (1,B,H), c (1,B,H)))."""
    B, T = token_ids.shape
    E = params["embedding"].shape[1]
    H = params["w_hh"].shape[1]
    O = params["w_fc"].shape[0]
    H_pad = _round_up(H, 128)
    O_pad = _round_up(O, 128)
    B_pad = _round_up(B, 8)

    wih_p, whh_p, b_p, wfc_p, bfc_p = _pack_weights(
        params["w_ih"], params["w_hh"], params["b_ih"], params["b_hh"],
        params["w_fc"], params["b_fc"], H, H_pad, O, O_pad)

    # Embedding lookup (gather) stays in XLA as glue.
    emb = params["embedding"][token_ids]                     # (B, T, E)
    x = jnp.transpose(emb, (1, 0, 2))                        # (T, B, E)
    x = jnp.pad(x, ((0, 0), (0, B_pad - B), (0, 0)))         # (T, B_pad, E)
    x_flat = x.reshape(T * B_pad, E).astype(jnp.bfloat16)

    # Stage 1: input projection for all timesteps at once.
    gx_flat = matmul_bias_pallas(x_flat, wih_p, b_p)         # (T*B_pad, 4H_pad)
    gx = gx_flat.reshape(T, B_pad, 4 * H_pad)

    # Stage 2: serial recurrence (only h @ Whh + elementwise per step).
    t_tile = _pick_t_tile(T)
    h_all, h_n, c_n = lstm_recurrence_pallas(gx, whh_p, t_tile=t_tile)

    # Stage 3: output projection for all timesteps at once.
    out_flat = matmul_bias_pallas(h_all.reshape(T * B_pad, H_pad),
                                  wfc_p, bfc_p)              # (T*B_pad, O_pad)
    out = out_flat.reshape(T, B_pad, O_pad)[:, :B, :O]
    out = jnp.transpose(out, (1, 0, 2))                      # (B, T, O)

    # PyTorch LSTM returns (num_layers, B, H) hidden / cell states.
    h_n = h_n[:B, :H][None, :, :]
    c_n = c_n[:B, :H][None, :, :]
    return out, (h_n, c_n)


# ----------------------------------------------------------------------------
# Parameter init (PyTorch-like) and pure-JAX reference for correctness.
# ----------------------------------------------------------------------------
def init_params(key, vocab_size, embedding_dim, hidden_size, output_size):
    ks = jax.random.split(key, 7)
    bound = 1.0 / np.sqrt(hidden_size)
    u = lambda k, shape, b: jax.random.uniform(k, shape, jnp.float32, -b, b)
    return {
        "embedding": jax.random.normal(ks[0], (vocab_size, embedding_dim),
                                       jnp.float32),
        "w_ih": u(ks[1], (4 * hidden_size, embedding_dim), bound),
        "w_hh": u(ks[2], (4 * hidden_size, hidden_size), bound),
        "b_ih": u(ks[3], (4 * hidden_size,), bound),
        "b_hh": u(ks[4], (4 * hidden_size,), bound),
        "w_fc": u(ks[5], (output_size, hidden_size), bound),
        "b_fc": u(ks[6], (output_size,), bound),
    }


def char_lstm_reference(params, token_ids):
    emb = params["embedding"][token_ids]                 # (B, T, E)
    B, T, E = emb.shape
    H = params["w_hh"].shape[1]
    wih_t = params["w_ih"].T
    whh_t = params["w_hh"].T
    b = params["b_ih"] + params["b_hh"]

    def step(carry, x_t):
        h, c = carry
        gates = x_t @ wih_t + h @ whh_t + b
        i = jax.nn.sigmoid(gates[:, 0 * H:1 * H])
        f = jax.nn.sigmoid(gates[:, 1 * H:2 * H])
        g = jnp.tanh(gates[:, 2 * H:3 * H])
        o = jax.nn.sigmoid(gates[:, 3 * H:4 * H])
        c = f * c + i * g
        h = o * jnp.tanh(c)
        return (h, c), h

    h0 = jnp.zeros((B, H), jnp.float32)
    c0 = jnp.zeros((B, H), jnp.float32)
    (h_n, c_n), hs = jax.lax.scan(step, (h0, c0),
                                  jnp.transpose(emb, (1, 0, 2)))
    hs = jnp.transpose(hs, (1, 0, 2))                    # (B, T, H)
    out = hs @ params["w_fc"].T + params["b_fc"]
    return out, (h_n[None], c_n[None])


if __name__ == "__main__":
    vocab_size, embedding_dim, hidden_size, output_size = 32, 16, 32, 16
    B, T = 2, 8

    key = jax.random.PRNGKey(0)
    pkey, xkey = jax.random.split(key)
    params = init_params(pkey, vocab_size, embedding_dim, hidden_size,
                         output_size)
    token_ids = jax.random.randint(xkey, (B, T), 0, vocab_size, jnp.int32)

    out, (h_n, c_n) = char_lstm_forward(params, token_ids)
    out = jax.block_until_ready(out)
    h_n = jax.block_until_ready(h_n)
    c_n = jax.block_until_ready(c_n)

    out_ref, (h_ref, c_ref) = char_lstm_reference(params, token_ids)
    # bf16 matmul inputs with f32 accumulation -> slightly looser tolerance
    # than a pure-f32 path.
    np.testing.assert_allclose(np.asarray(out), np.asarray(out_ref),
                               rtol=2e-2, atol=2e-2)
    np.testing.assert_allclose(np.asarray(h_n), np.asarray(h_ref),
                               rtol=2e-2, atol=2e-2)
    np.testing.assert_allclose(np.asarray(c_n), np.asarray(c_ref),
                               rtol=2e-2, atol=2e-2)

    print("KERNEL_OK")
</pallas_src>

<mosaic_0001>
module attributes {stable_mosaic.version = 11 : i64} {
  func.func @_matmul_bias_kernel(%arg0: i32, %arg1: memref<64x16xbf16, #tpu.memory_space<vmem>>, %arg2: memref<16x512xbf16, #tpu.memory_space<vmem>>, %arg3: memref<1x512xf32, #tpu.memory_space<vmem>>, %arg4: memref<64x512xf32, #tpu.memory_space<vmem>>) attributes {dimension_semantics = [#tpu.dimension_semantics<parallel>], iteration_bounds = array<i64: 1>, scalar_prefetch = 0 : i64, scratch_operands = 0 : i64, tpu.core_type = #tpu.core_type<tc>, window_params = [{transform_indices = @transform_0, window_bounds = array<i64: 64, 16>}, {pipeline_mode = #tpu.pipeline_mode<synchronous>, transform_indices = @transform_1, window_bounds = array<i64: 16, 512>}, {pipeline_mode = #tpu.pipeline_mode<synchronous>, transform_indices = @transform_2, window_bounds = array<i64: 1, 512>}, {transform_indices = @transform_3, window_bounds = array<i64: 64, 512>}]} {
    %c0 = arith.constant 0 : index
    %c0_0 = arith.constant 0 : index
    %0 = vector.load %arg1[%c0, %c0_0] : memref<64x16xbf16, #tpu.memory_space<vmem>>, vector<64x16xbf16>
    %c0_1 = arith.constant 0 : index
    %c0_2 = arith.constant 0 : index
    %1 = vector.load %arg2[%c0_1, %c0_2] : memref<16x512xbf16, #tpu.memory_space<vmem>>, vector<16x512xbf16>
    %cst = arith.constant dense<0.000000e+00> : vector<64x512xf32>
    %2 = tpu.matmul %0, %1, %cst {dimension_numbers = #tpu.dot_dimension_numbers<[1], [0], [0], [1], [0, 0, 1, 1], [], []>} : vector<64x16xbf16>, vector<16x512xbf16>, vector<64x512xf32> -> vector<64x512xf32>
    %c0_3 = arith.constant 0 : index
    %c0_4 = arith.constant 0 : index
    %3 = vector.load %arg3[%c0_3, %c0_4] : memref<1x512xf32, #tpu.memory_space<vmem>>, vector<1x512xf32>
    %4 = vector.broadcast %3 : vector<1x512xf32> to vector<64x512xf32>
    %5 = arith.addf %2, %4 : vector<64x512xf32>
    %c0_5 = arith.constant 0 : index
    %c0_6 = arith.constant 0 : index
    %6 = vector.load %arg4[%c0_5, %c0_6] : memref<64x512xf32, #tpu.memory_space<vmem>>, vector<64x512xf32>
    tpu.vector_store %arg4[%c0_5, %c0_6], %5 {strides = array<i32>} : memref<64x512xf32, #tpu.memory_space<vmem>>, vector<64x512xf32>,
    return
  }
  func.func @transform_0(%arg0: i32) -> (i32, i32) {
    %c0_i32 = arith.constant 0 : i32
    %c0_i32_0 = arith.constant 0 : i32
    return %arg0, %c0_i32 : i32, i32
  }
  func.func @transform_1(%arg0: i32) -> (i32, i32) {
    %c0_i32 = arith.constant 0 : i32
    %c0_i32_0 = arith.constant 0 : i32
    %c0_i32_1 = arith.constant 0 : i32
    return %c0_i32, %c0_i32_0 : i32, i32
  }
  func.func @transform_2(%arg0: i32) -> (i32, i32) {
    %c0_i32 = arith.constant 0 : i32
    %c0_i32_0 = arith.constant 0 : i32
    %c0_i32_1 = arith.constant 0 : i32
    return %c0_i32, %c0_i32_0 : i32, i32
  }
  func.func @transform_3(%arg0: i32) -> (i32, i32) {
    %c0_i32 = arith.constant 0 : i32
    %c0_i32_0 = arith.constant 0 : i32
    return %arg0, %c0_i32 : i32, i32
  }
}

</mosaic_0001>

<bundles_post_ra>
// kernel: tpu_custom_call.1
= control target key start
LH: loop header
LB: loop body
LE: loop exit
PB: predicated region body
PF: predicated region fallthrough
CT: control target
= control target key end

     0   :  { %v351_v2 = vmov 0   ;;  %vm90_vm0 = vcmask 130048   ;;  %s462_s0 = inlined_call_operand.vmem [shape: bf16[64,16], index: 0, kind: input, shape index: {}]   ;;  %s463_s1 = inlined_call_operand.vmem [shape: bf16[16,512], index: 1, kind: input, shape index: {}]   ;;  %s464_s2 = inlined_call_operand.vmem [shape: f32[1,512], index: 2, kind: input, shape index: {}]   ;;  %s465_s3 = inlined_call_operand.hbm [shape: f32[64,512], index: 3, kind: output, shape index: {}]  }
   0x1   :  { %v317_v0 = vld [vmem:[%s463_s1 + $0x4] ss:$16 sps:$4 sm:$0xff]   ;;  %v319_v1 = vld [vmem:[%s463_s1 + $0xc] ss:$16 sps:$4 sm:$0xff]   ;;  %135 = vmatprep.mubr.bf16.mxu0 %v351_v2  ;;  %208 = vmatprep.mubr.bf16.mxu1 %v351_v2  ;;  %v321_v3 = vld [vmem:[%s463_s1] ss:$16 sps:$4 sm:$0xff]  }
   0x2   :  { %103 = vmatprep.subr.bf16.mxu0 %v317_v0  ;;  %v322_v4 = vld [vmem:[%s463_s1 + $0x8] ss:$16 sps:$4 sm:$0xff]   ;;  %176 = vmatprep.subr.bf16.mxu1 %v319_v1  ;;  %v323_v5 = vld [vmem:[%s462_s0] sm:$0xff]  }
   0x3   :  { %104 = vmatpush1.bf16.msra.mxu0 %v321_v3  ;;  %177 = vmatpush1.bf16.msra.mxu1 %v322_v4 }
   0x6   :  { %305 = vmatmul.mubr.msk.bf16.vlgmr.msra.gmra.mrb[0].mxu0 %vm90_vm0, %v323_v5  ;;  %309 = vmatmul.mubr.msk.bf16.vlgmr.msra.gmra.mrb[0].mxu1 %vm90_vm0, %v323_v5 }
   0x7   :  { %8 = vsyncpa [#allocation3], 0  ;;  %145 = vmatprep.mubr.bf16.mxu0 %v351_v2  ;;  %218 = vmatprep.mubr.bf16.mxu1 %v351_v2  ;;  %v324_v6 = vld [vmem:[%s462_s0 + $0x8] sm:$0xff]   ;;  %v325_v7 = vld [vmem:[%s462_s0 + $0x10] sm:$0xff]   ;;  %v30_v9 = vlaneseq }
   0x8   :  { %v326_v8 = vld [vmem:[%s462_s0 + $0x18] sm:$0xff]   ;;  %v28_v13 = vld [vmem:[%s464_s2] sm:$0xf]  ;;  %s352_s0 = smov [#allocation2]  }
   0x9   :  { %v31_v10 = vshrl.u32 %v30_v9, 7  ;;  %s286_s2 = sshll.u32 %s352_s0, 4  ;;  %s287_s2 = int_to_ptr.vmem [resolvable:$true] %s286_s2 }
   0xa   :  { %s327_s29 = scalar_lea.vmem %s287_s2, 4096  ;;  %p332_p1 = scmp.lt.s32.totalorder %s287_s2, %s287_s2 }
   0xb   :  { %v32_v11 = vsub.s32 0, %v31_v10  ;;  %v40_v12 = vsub.s32 2, %v31_v10  ;;  %v36_v14 = vsub.s32 1, %v31_v10  ;;  %v44_v15 = vsub.s32 3, %v31_v10  ;;  %p328_p0 = scmp.ne.s32.totalorder %s287_s2, %s327_s29  ;;  %p333_p2 = scmp.lt.s32.totalorder %s327_s29, %s327_s29 }
   0xd   :  { %v410_v16 = vrot.slane %v28_v13, %v32_v11  ;;  %v412_v17 = vrot.slane %v28_v13, %v40_v12  ;;  %v414_v18 = vrot.slane %v28_v13, %v36_v14  ;;  %v416_v19 = vrot.slane %v28_v13, %v44_v15  ;;  %p334_p3 = por %p333_p2, %p332_p1 }
   0xe   :  { %306 = vmatmul.mubr.msk.bf16.gmra.mrb[4].mxu0 %vm90_vm0, %v324_v6  ;;  %310 = vmatmul.mubr.msk.bf16.gmra.mrb[4].mxu1 %vm90_vm0, %v324_v6 }
   0xf   :  { %155 = vmatprep.mubr.bf16.mxu0 %v351_v2  ;;  %228 = vmatprep.mubr.bf16.mxu1 %v351_v2  ;;  %p335_p4 = pnand %p334_p3, %p328_p0 }
  0x16   :  { %307 = vmatmul.mubr.msk.bf16.gmra.mrb[8].mxu0 %vm90_vm0, %v325_v7  ;;  %311 = vmatmul.mubr.msk.bf16.gmra.mrb[8].mxu1 %vm90_vm0, %v325_v7 }
  0x17   :  { %165 = vmatprep.mubr.bf16.mxu0 %v351_v2  ;;  %238 = vmatprep.mubr.bf16.mxu1 %v351_v2 }
  0x1e   :  { %308 = vmatmul.mubr.msk.bf16.gmra.mrb[12].mxu0 %vm90_vm0, %v326_v8  ;;  %312 = vmatmul.mubr.msk.bf16.gmra.mrb[12].mxu1 %vm90_vm0, %v326_v8 }
  0xd9   :  { %v137_v20 = vpop.f32.mrb[0].mxu0  ;;  %v210_v21 = vpop.f32.mrb[0].mxu1 }
  0xda   :  { %v138_v22 = vadd.f32 %v137_v20, %v410_v16  ;;  %v211_v23 = vadd.f32 %v210_v21, %v412_v17  ;;  %v139_v24 = vpop.f32.mrb[1].mxu0  ;;  %v212_v25 = vpop.f32.mrb[1].mxu1 }
  0xdb   :  { %v140_v26 = vadd.f32 %v139_v24, %v414_v18  ;;  %v213_v27 = vadd.f32 %v212_v25, %v416_v19  ;;  %v141_v28 = vpop.f32.mrb[2].mxu0  ;;  %v214_v29 = vpop.f32.mrb[2].mxu1 }
  0xdc   :  { %249 = vst [vmem:[#allocation2] sm:$0xff] %v138_v22  ;;  %251 = vst [vmem:[#allocation2 + $0x10] sm:$0xff] %v211_v23  ;;  %v142_v30 = vadd.f32 %v141_v28, %v410_v16  ;;  %v215_v31 = vadd.f32 %v214_v29, %v412_v17  ;;  %v143_v32 = vpop.f32.mrb[3].mxu0  ;;  %v216_v33 = vpop.f32.mrb[3].mxu1 }
  0xdd   :  { %250 = vst [vmem:[#allocation2 + $0x8] sm:$0xff] %v140_v26  ;;  %252 = vst [vmem:[#allocation2 + $0x18] sm:$0xff] %v213_v27  ;;  %v144_v34 = vadd.f32 %v143_v32, %v414_v18  ;;  %v217_v35 = vadd.f32 %v216_v33, %v416_v19 }
  0xde   :  { %253 = vst [vmem:[#allocation2 + $0x20] sm:$0xff] %v142_v30  ;;  %255 = vst [vmem:[#allocation2 + $0x30] sm:$0xff] %v215_v31 }
  0xdf   :  { %254 = vst [vmem:[#allocation2 + $0x28] sm:$0xff] %v144_v34  ;;  %256 = vst [vmem:[#allocation2 + $0x38] sm:$0xff] %v217_v35 }
  0xe1   :  { %v147_v36 = vpop.f32.mrb[4].mxu0  ;;  %v220_v37 = vpop.f32.mrb[4].mxu1 }
  0xe2   :  { %v148_v38 = vadd.f32 %v147_v36, %v410_v16  ;;  %v221_v39 = vadd.f32 %v220_v37, %v412_v17  ;;  %v149_v40 = vpop.f32.mrb[5].mxu0  ;;  %v222_v41 = vpop.f32.mrb[5].mxu1 }
  0xe3   :  { %v150_v42 = vadd.f32 %v149_v40, %v414_v18  ;;  %v223_v43 = vadd.f32 %v222_v41, %v416_v19  ;;  %v151_v44 = vpop.f32.mrb[6].mxu0  ;;  %v224_v45 = vpop.f32.mrb[6].mxu1 }
  0xe4   :  { %257 = vst [vmem:[#allocation2 + $0x40] sm:$0xff] %v148_v38  ;;  %259 = vst [vmem:[#allocation2 + $0x50] sm:$0xff] %v221_v39  ;;  %v152_v46 = vadd.f32 %v151_v44, %v410_v16  ;;  %v225_v47 = vadd.f32 %v224_v45, %v412_v17  ;;  %v153_v48 = vpop.f32.mrb[7].mxu0  ;;  %v226_v49 = vpop.f32.mrb[7].mxu1 }
  0xe5   :  { %258 = vst [vmem:[#allocation2 + $0x48] sm:$0xff] %v150_v42  ;;  %260 = vst [vmem:[#allocation2 + $0x58] sm:$0xff] %v223_v43  ;;  %v154_v50 = vadd.f32 %v153_v48, %v414_v18  ;;  %v227_v51 = vadd.f32 %v226_v49, %v416_v19 }
  0xe6   :  { %261 = vst [vmem:[#allocation2 + $0x60] sm:$0xff] %v152_v46  ;;  %263 = vst [vmem:[#allocation2 + $0x70] sm:$0xff] %v225_v47 }
  0xe7   :  { %262 = vst [vmem:[#allocation2 + $0x68] sm:$0xff] %v154_v50  ;;  %264 = vst [vmem:[#allocation2 + $0x78] sm:$0xff] %v227_v51 }
  0xe9   :  { %v157_v52 = vpop.f32.mrb[8].mxu0  ;;  %v230_v53 = vpop.f32.mrb[8].mxu1 }
  0xea   :  { %v158_v54 = vadd.f32 %v157_v52, %v410_v16  ;;  %v231_v55 = vadd.f32 %v230_v53, %v412_v17  ;;  %v159_v56 = vpop.f32.mrb[9].mxu0  ;;  %v232_v57 = vpop.f32.mrb[9].mxu1 }
  0xeb   :  { %v160_v58 = vadd.f32 %v159_v56, %v414_v18  ;;  %v233_v59 = vadd.f32 %v232_v57, %v416_v19  ;;  %v161_v60 = vpop.f32.mrb[10].mxu0  ;;  %v234_v61 = vpop.f32.mrb[10].mxu1 }
  0xec   :  { %265 = vst [vmem:[#allocation2 + $0x80] sm:$0xff] %v158_v54  ;;  %267 = vst [vmem:[#allocation2 + $0x90] sm:$0xff] %v231_v55  ;;  %v162_v62 = vadd.f32 %v161_v60, %v410_v16  ;;  %v235_v63 = vadd.f32 %v234_v61, %v412_v17  ;;  %v163_v0 = vpop.f32.mrb[11].mxu0  ;;  %v236_v1 = vpop.f32.mrb[11].mxu1 }
  0xed   :  { %266 = vst [vmem:[#allocation2 + $0x88] sm:$0xff] %v160_v58  ;;  %268 = vst [vmem:[#allocation2 + $0x98] sm:$0xff] %v233_v59  ;;  %v164_v2 = vadd.f32 %v163_v0, %v414_v18  ;;  %v237_v3 = vadd.f32 %v236_v1, %v416_v19 }
  0xee   :  { %269 = vst [vmem:[#allocation2 + $0xa0] sm:$0xff] %v162_v62  ;;  %271 = vst [vmem:[#allocation2 + $0xb0] sm:$0xff] %v235_v63 }
  0xef   :  { %270 = vst [vmem:[#allocation2 + $0xa8] sm:$0xff] %v164_v2  ;;  %272 = vst [vmem:[#allocation2 + $0xb8] sm:$0xff] %v237_v3 }
  0xf1   :  { %v167_v4 = vpop.f32.mrb[12].mxu0  ;;  %v240_v5 = vpop.f32.mrb[12].mxu1 }
  0xf2   :  { %v168_v6 = vadd.f32 %v167_v4, %v410_v16  ;;  %v241_v7 = vadd.f32 %v240_v5, %v412_v17  ;;  %v169_v8 = vpop.f32.mrb[13].mxu0  ;;  %v242_v9 = vpop.f32.mrb[13].mxu1 }
  0xf3   :  { %v170_v10 = vadd.f32 %v169_v8, %v414_v18  ;;  %v243_v11 = vadd.f32 %v242_v9, %v416_v19  ;;  %v171_v12 = vpop.f32.mrb[14].mxu0  ;;  %v244_v13 = vpop.f32.mrb[14].mxu1 }
  0xf4   :  { %273 = vst [vmem:[#allocation2 + $0xc0] sm:$0xff] %v168_v6  ;;  %275 = vst [vmem:[#allocation2 + $0xd0] sm:$0xff] %v241_v7  ;;  %v172_v14 = vadd.f32 %v171_v12, %v410_v16  ;;  %v245_v15 = vadd.f32 %v244_v13, %v412_v17  ;;  %v173_v20 = vpop.f32.mrb[15].mxu0  ;;  %v246_v21 = vpop.f32.mrb[15].mxu1 }
  0xf5   :  { %274 = vst [vmem:[#allocation2 + $0xc8] sm:$0xff] %v170_v10  ;;  %276 = vst [vmem:[#allocation2 + $0xd8] sm:$0xff] %v243_v11  ;;  %v174_v22 = vadd.f32 %v173_v20, %v414_v18  ;;  %v247_v23 = vadd.f32 %v246_v21, %v416_v19 }
  0xf6   :  { %277 = vst [vmem:[#allocation2 + $0xe0] sm:$0xff] %v172_v14  ;;  %279 = vst [vmem:[#allocation2 + $0xf0] sm:$0xff] %v245_v15 }
  0xf7   :  { %278 = vst [vmem:[#allocation2 + $0xe8] sm:$0xff] %v174_v22  ;;  %280 = vst [vmem:[#allocation2 + $0xf8] sm:$0xff] %v247_v23 }
  0xf8   :  { %338 = shalt.err (!%p335_p4)
}
  0xf9   :  { %s339_s5 = scalar_lea.hbm %s465_s3, 4096 }
  0xfa   :  { %p340_p5 = scmp.ne.s32.totalorder %s465_s3, %s339_s5  ;;  %p343_p6 = scmp.lt.u32.totalorder %s339_s5, %s465_s3 }
  0xfc   :  { %p345_p7 = pnand %p343_p6, %p340_p5 }
  0xfe   :  { %348 = shalt.err (!%p345_p7)
}
  0xff   :  { %s353_s10 = smov 512   ;;  %s354_s11 = smov 32  }
 0x100   :  { %292 = dma.vmem_to_hbm [thread:$0]  %s287_s2, 4096, %s465_s3, [#allocation3], %s353_s10, %s353_s10, %s354_s11  }
 0x101   :  { %349 = dma.done.wait [#allocation3], 4096  }
 0x102   :  { %350 = vsyncadd [#allocation3], 4294963200 }
 0x103   :  { %296 = vsyncpa [#allocation3], 1 }

</bundles_post_ra>
